<compile_context>
chip_gen: v7x
topology: tpu7x:2x2x1
jax: 0.10.0
libtpu: 0.0.40
codegen_flags: <defaults>
</compile_context>

<pallas_src>
import math
import jax
import jax.numpy as jnp
from jax.experimental import pallas as pl
from jax.experimental.pallas import tpu as pltpu


LANE = 128


def _round_up(n, m):
    return ((n + m - 1) // m) * m


def classifier_kernel(x_ref, w1_ref, b1_ref, w2_ref, b2_ref, w3_ref, b3_ref, o_ref):
    # x arrives as f32 straight from HBM (no wrapper pad/cast); cast to bf16 on the VPU.
    x = x_ref[...].astype(jnp.bfloat16)  # [tile, D_in]

    # fc1 (bf16 MXU inputs, f32 accumulation) + bias + ReLU
    h1 = jnp.dot(x, w1_ref[...], preferred_element_type=jnp.float32) + b1_ref[...]
    h1 = jnp.maximum(h1, 0.0).astype(jnp.bfloat16)

    # (dropout p=0.7 -> identity in eval mode)

    # fc2 + ReLU
    h2 = jnp.dot(h1, w2_ref[...], preferred_element_type=jnp.float32) + b2_ref[...]
    h2 = jnp.maximum(h2, 0.0).astype(jnp.bfloat16)

    # fc3 + sigmoid.  sigmoid(z) = 1 / (1 + exp(-z)); exp and the approximate
    # reciprocal both run on the EUP, keeping the epilogue off the VALU.
    logits = jnp.dot(h2, w3_ref[...], preferred_element_type=jnp.float32) + b3_ref[...]
    o_ref[...] = pl.reciprocal(1.0 + jnp.exp(-logits), approx=True)


def prepare_params(params):
    """One-time parameter prep (do this at init, reuse every forward call).

    params: (w1, b1, w2, b2, w3, b3) with weights already transposed to [in, out]
            and biases shaped [1, out], all float32.
    Returns lane-dense, bf16-cast weights (hidden dims padded to a multiple of 128;
    D_in and D_out left at their true sizes) and f32 biases.
    """
    w1, b1, w2, b2, w3, b3 = params
    D_in, H1 = w1.shape
    H2 = w2.shape[1]
    D_out = w3.shape[1]
    H1_p = _round_up(H1, LANE)
    H2_p = _round_up(H2, LANE)

    def pad2(a, rows, cols, dtype):
        return jnp.pad(a, ((0, rows - a.shape[0]), (0, cols - a.shape[1]))).astype(dtype)

    w1_p = pad2(w1, D_in, H1_p, jnp.bfloat16)   # [D_in, H1_p]
    w2_p = pad2(w2, H1_p, H2_p, jnp.bfloat16)   # [H1_p, H2_p]
    w3_p = pad2(w3, H2_p, D_out, jnp.bfloat16)  # [H2_p, D_out]  (no lane pad on D_out)
    b1_p = pad2(b1, 1, H1_p, jnp.float32)
    b2_p = pad2(b2, 1, H2_p, jnp.float32)
    b3_p = pad2(b3, 1, D_out, jnp.float32)
    return (w1_p, b1_p, w2_p, b2_p, w3_p, b3_p)


def classifier_forward(x, prepared, *, batch_tile=None):
    """Fused MLP forward.  x: [B, D_in] float32.  prepared: output of prepare_params."""
    w1, b1, w2, b2, w3, b3 = prepared
    B, D_in = x.shape
    assert w1.shape[0] == D_in
    H1_p = w1.shape[1]
    H2_p = w2.shape[1]
    D_out = w3.shape[1]

    if batch_tile is None:
        if B <= 256:
            # Single grid step: no pipeline bookkeeping, weights DMA'd exactly once.
            batch_tile = _round_up(B, 16)
        else:
            # >= 2 grid steps so v7x's two TensorCores both get work ("parallel" axis);
            # cap at 1024 rows, the v6e/v5e HBM-roofline sweet spot.
            batch_tile = min(1024, _round_up(pl.cdiv(B, 2), 16))
    assert batch_tile % 16 == 0  # bf16 sublane packing is 16
    B_p = _round_up(B, batch_tile)

    # Only the batch axis ever needs padding (feature dims use full-array blocks).
    x_in = x if B_p == B else jnp.pad(x, ((0, B_p - B), (0, 0)))

    grid = (B_p // batch_tile,)
    full = lambda i: (0, 0)  # weights/biases resident; constant index across the grid

    out_p = pl.pallas_call(
        classifier_kernel,
        out_shape=jax.ShapeDtypeStruct((B_p, D_out), jnp.float32),
        grid_spec=pltpu.PrefetchScalarGridSpec(
            num_scalar_prefetch=0,
            grid=grid,
            in_specs=[
                pl.BlockSpec((batch_tile, D_in), lambda i: (i, 0)),  # x tile (full D_in)
                pl.BlockSpec((D_in, H1_p), full),   # w1
                pl.BlockSpec((1, H1_p), full),      # b1
                pl.BlockSpec((H1_p, H2_p), full),   # w2
                pl.BlockSpec((1, H2_p), full),      # b2
                pl.BlockSpec((H2_p, D_out), full),  # w3 (full D_out, no lane pad)
                pl.BlockSpec((1, D_out), full),     # b3
            ],
            out_specs=pl.BlockSpec((batch_tile, D_out), lambda i: (i, 0)),
        ),
        compiler_params=pltpu.CompilerParams(
            dimension_semantics=("parallel",)),
    )(x_in, w1, b1, w2, b2, w3, b3)

    # Strip batch padding (if any) outside the kernel.
    return out_p if B_p == B else out_p[:B]


def init_linear(key, in_dim, out_dim):
    # Matches PyTorch nn.Linear default init: U(-1/sqrt(in_dim), 1/sqrt(in_dim)).
    kw, kb = jax.random.split(key)
    bound = 1.0 / math.sqrt(in_dim)
    # Stored already transposed: [in_dim, out_dim]  (kernel computes x @ W + b).
    w = jax.random.uniform(kw, (in_dim, out_dim), jnp.float32, -bound, bound)
    b = jax.random.uniform(kb, (1, out_dim), jnp.float32, -bound, bound)
    return w, b


if __name__ == "__main__":
    key = jax.random.PRNGKey(0)
    k_x, k1, k2, k3 = jax.random.split(key, 4)

    # Small shapes consistent with the module.
    batch = 16
    input_dim = 32
    hidden_dim = 32          # -> fc2 out = hidden_dim // 2 = 16
    output_dim = 8

    x = jax.random.normal(k_x, (batch, input_dim), jnp.float32)
    w1, b1 = init_linear(k1, input_dim, hidden_dim)
    w2, b2 = init_linear(k2, hidden_dim, hidden_dim // 2)
    w3, b3 = init_linear(k3, hidden_dim // 2, output_dim)

    # One-time parameter prep (pad + bf16 cast), reused for every forward call.
    prepared = prepare_params((w1, b1, w2, b2, w3, b3))
    prepared = jax.block_until_ready(prepared)

    out = classifier_forward(x, prepared)
    out = jax.block_until_ready(out)
    assert out.shape == (batch, output_dim)

    # Reference 1: same bf16-input / f32-accumulation math as the kernel (tight check).
    xb, w1b, w2b, w3b = (a.astype(jnp.bfloat16) for a in (x, w1, w2, w3))
    h1 = jnp.maximum(jnp.dot(xb, w1b, preferred_element_type=jnp.float32) + b1, 0.0)
    h2 = jnp.maximum(
        jnp.dot(h1.astype(jnp.bfloat16), w2b, preferred_element_type=jnp.float32) + b2, 0.0)
    logits = jnp.dot(h2.astype(jnp.bfloat16), w3b, preferred_element_type=jnp.float32) + b3
    ref_bf16 = jax.nn.sigmoid(logits)
    assert jnp.allclose(out, ref_bf16, atol=5e-3, rtol=0.0)

    # Reference 2: full-float32 eval-mode forward (loose check, bounds bf16 cast error).
    h1f = jnp.maximum(x @ w1 + b1, 0.0)
    h2f = jnp.maximum(h1f @ w2 + b2, 0.0)
    ref_f32 = jax.nn.sigmoid(h2f @ w3 + b3)
    assert jnp.allclose(out, ref_f32, atol=3e-2, rtol=0.0)

    print("KERNEL_OK")
</pallas_src>

<mosaic_0001>
module attributes {stable_mosaic.version = 11 : i64} {
  func.func @classifier_kernel(%arg0: i32, %arg1: memref<16x32xf32, #tpu.memory_space<vmem>>, %arg2: memref<32x128xbf16, #tpu.memory_space<vmem>>, %arg3: memref<1x128xf32, #tpu.memory_space<vmem>>, %arg4: memref<128x128xbf16, #tpu.memory_space<vmem>>, %arg5: memref<1x128xf32, #tpu.memory_space<vmem>>, %arg6: memref<128x8xbf16, #tpu.memory_space<vmem>>, %arg7: memref<1x8xf32, #tpu.memory_space<vmem>>, %arg8: memref<16x8xf32, #tpu.memory_space<vmem>>) attributes {dimension_semantics = [#tpu.dimension_semantics<parallel>], iteration_bounds = array<i64: 1>, scalar_prefetch = 0 : i64, scratch_operands = 0 : i64, tpu.core_type = #tpu.core_type<tc>, window_params = [{transform_indices = @transform_0, window_bounds = array<i64: 16, 32>}, {pipeline_mode = #tpu.pipeline_mode<synchronous>, transform_indices = @transform_1, window_bounds = array<i64: 32, 128>}, {pipeline_mode = #tpu.pipeline_mode<synchronous>, transform_indices = @transform_2, window_bounds = array<i64: 1, 128>}, {pipeline_mode = #tpu.pipeline_mode<synchronous>, transform_indices = @transform_3, window_bounds = array<i64: 128, 128>}, {pipeline_mode = #tpu.pipeline_mode<synchronous>, transform_indices = @transform_4, window_bounds = array<i64: 1, 128>}, {pipeline_mode = #tpu.pipeline_mode<synchronous>, transform_indices = @transform_5, window_bounds = array<i64: 128, 8>}, {pipeline_mode = #tpu.pipeline_mode<synchronous>, transform_indices = @transform_6, window_bounds = array<i64: 1, 8>}, {transform_indices = @transform_7, window_bounds = array<i64: 16, 8>}]} {
    %c0 = arith.constant 0 : index
    %c0_0 = arith.constant 0 : index
    %0 = vector.load %arg1[%c0, %c0_0] : memref<16x32xf32, #tpu.memory_space<vmem>>, vector<16x32xf32>
    %1 = arith.truncf %0 : vector<16x32xf32> to vector<16x32xbf16>
    %c0_1 = arith.constant 0 : index
    %c0_2 = arith.constant 0 : index
    %2 = vector.load %arg2[%c0_1, %c0_2] : memref<32x128xbf16, #tpu.memory_space<vmem>>, vector<32x128xbf16>
    %cst = arith.constant dense<0.000000e+00> : vector<16x128xf32>
    %3 = tpu.matmul %1, %2, %cst {dimension_numbers = #tpu.dot_dimension_numbers<[1], [0], [0], [1], [0, 0, 1, 1], [], []>} : vector<16x32xbf16>, vector<32x128xbf16>, vector<16x128xf32> -> vector<16x128xf32>
    %c0_3 = arith.constant 0 : index
    %c0_4 = arith.constant 0 : index
    %4 = vector.load %arg3[%c0_3, %c0_4] : memref<1x128xf32, #tpu.memory_space<vmem>>, vector<1x128xf32>
    %5 = vector.broadcast %4 : vector<1x128xf32> to vector<16x128xf32>
    %6 = arith.addf %3, %5 : vector<16x128xf32>
    %cst_5 = arith.constant 0.000000e+00 : f32
    %7 = vector.broadcast %cst_5 : f32 to vector<16x128xf32>
    %8 = arith.maximumf %6, %7 : vector<16x128xf32>
    %9 = arith.truncf %8 : vector<16x128xf32> to vector<16x128xbf16>
    %c0_6 = arith.constant 0 : index
    %c0_7 = arith.constant 0 : index
    %10 = vector.load %arg4[%c0_6, %c0_7] : memref<128x128xbf16, #tpu.memory_space<vmem>>, vector<128x128xbf16>
    %cst_8 = arith.constant dense<0.000000e+00> : vector<16x128xf32>
    %11 = tpu.matmul %9, %10, %cst_8 {dimension_numbers = #tpu.dot_dimension_numbers<[1], [0], [0], [1], [0, 0, 1, 1], [], []>} : vector<16x128xbf16>, vector<128x128xbf16>, vector<16x128xf32> -> vector<16x128xf32>
    %c0_9 = arith.constant 0 : index
    %c0_10 = arith.constant 0 : index
    %12 = vector.load %arg5[%c0_9, %c0_10] : memref<1x128xf32, #tpu.memory_space<vmem>>, vector<1x128xf32>
    %13 = vector.broadcast %12 : vector<1x128xf32> to vector<16x128xf32>
    %14 = arith.addf %11, %13 : vector<16x128xf32>
    %cst_11 = arith.constant 0.000000e+00 : f32
    %15 = vector.broadcast %cst_11 : f32 to vector<16x128xf32>
    %16 = arith.maximumf %14, %15 : vector<16x128xf32>
    %17 = arith.truncf %16 : vector<16x128xf32> to vector<16x128xbf16>
    %c0_12 = arith.constant 0 : index
    %c0_13 = arith.constant 0 : index
    %18 = vector.load %arg6[%c0_12, %c0_13] : memref<128x8xbf16, #tpu.memory_space<vmem>>, vector<128x8xbf16>
    %cst_14 = arith.constant dense<0.000000e+00> : vector<16x8xf32>
    %19 = tpu.matmul %17, %18, %cst_14 {dimension_numbers = #tpu.dot_dimension_numbers<[1], [0], [0], [1], [0, 0, 1, 1], [], []>} : vector<16x128xbf16>, vector<128x8xbf16>, vector<16x8xf32> -> vector<16x8xf32>
    %c0_15 = arith.constant 0 : index
    %c0_16 = arith.constant 0 : index
    %20 = vector.load %arg7[%c0_15, %c0_16] : memref<1x8xf32, #tpu.memory_space<vmem>>, vector<1x8xf32>
    %21 = vector.broadcast %20 : vector<1x8xf32> to vector<16x8xf32>
    %22 = arith.addf %19, %21 : vector<16x8xf32>
    %cst_17 = arith.constant 0.000000e+00 : f32
    %23 = vector.broadcast %cst_17 : f32 to vector<16x8xf32>
    %24 = arith.subf %23, %22 : vector<16x8xf32>
    %25 = math.exp %24 : vector<16x8xf32>
    %cst_18 = arith.constant 1.000000e+00 : f32
    %26 = vector.broadcast %cst_18 : f32 to vector<16x8xf32>
    %27 = arith.addf %26, %25 : vector<16x8xf32>
    %28 = tpu.reciprocal %27 {approx = true} : vector<16x8xf32> -> vector<16x8xf32>
    %c0_19 = arith.constant 0 : index
    %c0_20 = arith.constant 0 : index
    %29 = vector.load %arg8[%c0_19, %c0_20] : memref<16x8xf32, #tpu.memory_space<vmem>>, vector<16x8xf32>
    tpu.vector_store %arg8[%c0_19, %c0_20], %28 {strides = array<i32>} : memref<16x8xf32, #tpu.memory_space<vmem>>, vector<16x8xf32>,
    return
  }
  func.func @transform_0(%arg0: i32) -> (i32, i32) {
    %c0_i32 = arith.constant 0 : i32
    %c0_i32_0 = arith.constant 0 : i32
    return %arg0, %c0_i32 : i32, i32
  }
  func.func @transform_1(%arg0: i32) -> (i32, i32) {
    %c0_i32 = arith.constant 0 : i32
    %c0_i32_0 = arith.constant 0 : i32
    %c0_i32_1 = arith.constant 0 : i32
    return %c0_i32, %c0_i32_0 : i32, i32
  }
  func.func @transform_2(%arg0: i32) -> (i32, i32) {
    %c0_i32 = arith.constant 0 : i32
    %c0_i32_0 = arith.constant 0 : i32
    %c0_i32_1 = arith.constant 0 : i32
    return %c0_i32, %c0_i32_0 : i32, i32
  }
  func.func @transform_3(%arg0: i32) -> (i32, i32) {
    %c0_i32 = arith.constant 0 : i32
    %c0_i32_0 = arith.constant 0 : i32
    %c0_i32_1 = arith.constant 0 : i32
    return %c0_i32, %c0_i32_0 : i32, i32
  }
  func.func @transform_4(%arg0: i32) -> (i32, i32) {
    %c0_i32 = arith.constant 0 : i32
    %c0_i32_0 = arith.constant 0 : i32
    %c0_i32_1 = arith.constant 0 : i32
    return %c0_i32, %c0_i32_0 : i32, i32
  }
  func.func @transform_5(%arg0: i32) -> (i32, i32) {
    %c0_i32 = arith.constant 0 : i32
    %c0_i32_0 = arith.constant 0 : i32
    %c0_i32_1 = arith.constant 0 : i32
    return %c0_i32, %c0_i32_0 : i32, i32
  }
  func.func @transform_6(%arg0: i32) -> (i32, i32) {
    %c0_i32 = arith.constant 0 : i32
    %c0_i32_0 = arith.constant 0 : i32
    %c0_i32_1 = arith.constant 0 : i32
    return %c0_i32, %c0_i32_0 : i32, i32
  }
  func.func @transform_7(%arg0: i32) -> (i32, i32) {
    %c0_i32 = arith.constant 0 : i32
    %c0_i32_0 = arith.constant 0 : i32
    return %arg0, %c0_i32 : i32, i32
  }
}

</mosaic_0001>

<bundles_post_ra>
// kernel: tpu_custom_call.1
= control target key start
LH: loop header
LB: loop body
LE: loop exit
PB: predicated region body
PF: predicated region fallthrough
CT: control target
= control target key end

     0   :  { %12 = vsyncpa [#allocation3], 0  ;;  %s707_s0 = inlined_call_operand.hbm [shape: f32[16,32], index: 0, kind: input, shape index: {}]   ;;  %s708_s1 = inlined_call_operand.hbm [shape: bf16[32,128], index: 1, kind: input, shape index: {}]   ;;  %s709_s2 = inlined_call_operand.vmem [shape: f32[1,128], index: 2, kind: input, shape index: {}]   ;;  %s710_s3 = inlined_call_operand.vmem [shape: bf16[128,128], index: 3, kind: input, shape index: {}]   ;;  %s711_s4 = inlined_call_operand.vmem [shape: f32[1,128], index: 4, kind: input, shape index: {}]   ;;  %s712_s5 = inlined_call_operand.vmem [shape: bf16[128,8], index: 5, kind: input, shape index: {}]   ;;  %s713_s6 = inlined_call_operand.vmem [shape: f32[1,8], index: 6, kind: input, shape index: {}]   ;;  %s714_s7 = inlined_call_operand.vmem [shape: f32[16,8], index: 7, kind: output, shape index: {}]  }
   0x1   :  { %13 = vsyncpa [#allocation5], 0  ;;  %s548_s24 = smov [#allocation2]   ;;  %s500_s28 = scalar_lea.hbm %s707_s0, 256 }
   0x2   :  { %s19_s25 = sshll.u32 %s548_s24, 4  ;;  %p501_p0 = scmp.ne.s32.totalorder %s707_s0, %s500_s28  ;;  %s20_s25 = int_to_ptr.vmem [resolvable:$true] %s19_s25 }
   0x3   :  { %p504_p1 = scmp.lt.u32.totalorder %s500_s28, %s707_s0 }
   0x5   :  { %p506_p2 = pnand %p504_p1, %p501_p0 }
   0x7   :  { %509 = shalt.err (!%p506_p2)
}
   0x8   :  { %s510_s10 = scalar_lea.vmem %s20_s25, 256  ;;  %p515_p4 = scmp.lt.s32.totalorder %s20_s25, %s20_s25 }
   0x9   :  { %p511_p3 = scmp.ne.s32.totalorder %s20_s25, %s510_s10  ;;  %p516_p5 = scmp.lt.s32.totalorder %s510_s10, %s510_s10 }
   0xb   :  { %p517_p6 = por %p516_p5, %p515_p4 }
   0xd   :  { %p518_p7 = pnand %p517_p6, %p511_p3 }
   0xf   :  { %521 = shalt.err (!%p518_p7)
}
  0x10   :  { %s549_s11 = smov 128   ;;  %s550_s12 = smov 8  }
  0x11   :  { %25 = dma.hbm_to_vmem [thread:$0]  %s707_s0, 256, %s20_s25, [#allocation3], %s549_s11, %s549_s11, %s550_s12  }
  0x12   :  { %s551_s15 = smov [#allocation4]   ;;  %s522_s19 = scalar_lea.hbm %s708_s1, 256 }
  0x13   :  { %s31_s16 = sshll.u32 %s551_s15, 4  ;;  %p523_p8 = scmp.ne.s32.totalorder %s708_s1, %s522_s19  ;;  %s32_s16 = int_to_ptr.vmem [resolvable:$true] %s31_s16 }
  0x14   :  { %p526_p9 = scmp.lt.u32.totalorder %s522_s19, %s708_s1 }
  0x16   :  { %p528_p10 = pnand %p526_p9, %p523_p8 }
  0x18   :  { %531 = shalt.err (!%p528_p10)
}
  0x19   :  { %s532_s24 = scalar_lea.vmem %s32_s16, 256  ;;  %p537_p12 = scmp.lt.s32.totalorder %s32_s16, %s32_s16 }
  0x1a   :  { %p533_p11 = scmp.ne.s32.totalorder %s32_s16, %s532_s24  ;;  %p538_p13 = scmp.lt.s32.totalorder %s532_s24, %s532_s24 }
  0x1c   :  { %p539_p0 = por %p538_p13, %p537_p12 }
  0x1e   :  { %p540_p1 = pnand %p539_p0, %p533_p11 }
  0x20   :  { %543 = shalt.err (!%p540_p1)
}
  0x21   :  { %s552_s0 = smov 64   ;;  %s553_s25 = smov 4  }
  0x22   :  { %37 = dma.hbm_to_vmem [thread:$0]  %s708_s1, 256, %s32_s16, [#allocation5], %s552_s0, %s552_s0, %s553_s25  }
  0x23   :  { %544 = dma.done.wait [#allocation3], 256  }
  0x24   :  { %545 = vsyncadd [#allocation3], 4294967040 }
  0x25   :  { %546 = dma.done.wait [#allocation5], 256  }
  0x26   :  { %547 = vsyncadd [#allocation5], 4294967040  ;;  %v554_v0 = vmov 0.0   ;;  %vm555_vm0 = vmmov 0   ;;  %v474_v1 = vld [vmem:[#allocation4] sm:$0xff]   ;;  %v475_v2 = vld [vmem:[#allocation4 + $0x8] sm:$0xff]  }
  0x27   :  { %418 = vmatprep.subr.bf16.mxu0 %v554_v0  ;;  %422 = vmatprep.mubr.msk.bf16.mxu0 %vm555_vm0, %v554_v0  ;;  %v55_v3 = vld [vmem:[#allocation2] sm:$0xff]  ;;  %v56_v4 = vld [vmem:[#allocation2 + $0x8] sm:$0xff]  ;;  %vm81_vm1 = vcmask 261120   ;;  %v478_v8 = vld [vmem:[%s710_s3 + $0x10] sm:$0xff]   ;;  %vm366_vm2 = vcmask 64512  }
  0x28   :  { %426 = vmatprep.subr.bf16.mxu1 %v554_v0  ;;  %442 = vmatprep.mubr.msk.bf16.mxu1 %vm555_vm0, %v554_v0  ;;  %v476_v5 = vld [vmem:[%s710_s3] sm:$0xff]   ;;  %v57_v6 = vpack.c.bf16 %v56_v4, %v55_v3  ;;  %v477_v7 = vld [vmem:[%s710_s3 + $0x8] sm:$0xff]   ;;  %v479_v9 = vld [vmem:[%s710_s3 + $0x18] sm:$0xff]  }
  0x29   :  { %419 = vmatpush3.bf16.msra.mxu0 %v474_v1  ;;  %427 = vmatpush3.bf16.msra.mxu1 %v476_v5  ;;  %v480_v10 = vld [vmem:[%s710_s3 + $0x20] sm:$0xff]   ;;  %v481_v11 = vld [vmem:[%s710_s3 + $0x28] sm:$0xff]   ;;  %v482_v12 = vld [vmem:[%s710_s3 + $0x30] sm:$0xff]  }
  0x2a   :  { %420 = vmatprep.subr.bf16.mxu0 %v554_v0  ;;  %428 = vmatprep.subr.bf16.mxu1 %v554_v0  ;;  %v483_v13 = vld [vmem:[%s710_s3 + $0x38] sm:$0xff]   ;;  %v484_v14 = vld [vmem:[%s712_s5] sm:$0xff]   ;;  %v485_v15 = vld [vmem:[%s712_s5 + $0x8] sm:$0xff]  }
  0x2b   :  { %v486_v16 = vld [vmem:[%s712_s5 + $0x10] sm:$0xff]   ;;  %v487_v17 = vld [vmem:[%s712_s5 + $0x18] sm:$0xff]   ;;  %v488_v18 = vld [vmem:[%s712_s5 + $0x20] sm:$0xff]  }
  0x2c   :  { %v489_v19 = vld [vmem:[%s712_s5 + $0x28] sm:$0xff]   ;;  %v375_v20 = vld [vmem:[%s709_s2] ss:$0 sm:$0xff]  ;;  %v490_v30 = vld [vmem:[%s712_s5 + $0x30] sm:$0xff]  }
  0x2d   :  { %421 = vmatpush3.bf16.msra.mxu0 %v475_v2  ;;  %429 = vmatpush3.bf16.msra.mxu1 %v477_v7  ;;  %v491_v31 = vld [vmem:[%s712_s5 + $0x38] sm:$0xff]   ;;  %v379_v32 = vld [vmem:[%s711_s4] ss:$0 sm:$0xff] }
  0x2e   :  { %446 = vmatprep.subr.bf16.mxu0 %v554_v0  ;;  %430 = vmatprep.subr.bf16.mxu1 %v554_v0  ;;  %v388_v42 = vld [vmem:[%s713_s6] ss:$0 sm:$0xff] }
  0x30   :  { %423 = vmatmul.mubr.msk.bf16.vlgmr.msra.gmra.mrb[0].mxu0 %vm81_vm1, %v57_v6 }
  0x31   :  { %462 = vmatprep.mubr.msk.bf16.mxu0 %vm555_vm0, %v554_v0  ;;  %431 = vmatpush3.bf16.msra.mxu1 %v478_v8 }
  0x32   :  { %432 = vmatprep.subr.bf16.mxu1 %v554_v0  ;;  %447 = vmatpush3.bf16.msra.mxu0 %v484_v14 }
  0x33   :  { %448 = vmatprep.subr.bf16.mxu0 %v554_v0 }
  0x35   :  { %433 = vmatpush3.bf16.msra.mxu1 %v479_v9 }
  0x36   :  { %434 = vmatprep.subr.bf16.mxu1 %v554_v0  ;;  %449 = vmatpush3.bf16.msra.mxu0 %v485_v15 }
  0x37   :  { %450 = vmatprep.subr.bf16.mxu0 %v554_v0 }
  0x39   :  { %435 = vmatpush3.bf16.msra.mxu1 %v480_v10 }
  0x3a   :  { %436 = vmatprep.subr.bf16.mxu1 %v554_v0  ;;  %451 = vmatpush3.bf16.msra.mxu0 %v486_v16 }
  0x3b   :  { %452 = vmatprep.subr.bf16.mxu0 %v554_v0 }
  0x3d   :  { %437 = vmatpush3.bf16.msra.mxu1 %v481_v11 }
  0x3e   :  { %438 = vmatprep.subr.bf16.mxu1 %v554_v0  ;;  %453 = vmatpush3.bf16.msra.mxu0 %v487_v17 }
  0x3f   :  { %454 = vmatprep.subr.bf16.mxu0 %v554_v0 }
  0x41   :  { %439 = vmatpush3.bf16.msra.mxu1 %v482_v12 }
  0x42   :  { %440 = vmatprep.subr.bf16.mxu1 %v554_v0  ;;  %455 = vmatpush3.bf16.msra.mxu0 %v488_v18 }
  0x43   :  { %456 = vmatprep.subr.bf16.mxu0 %v554_v0 }
  0x45   :  { %441 = vmatpush3.bf16.msra.mxu1 %v483_v13 }
  0x46   :  { %457 = vmatpush3.bf16.msra.mxu0 %v489_v19 }
  0x47   :  { %458 = vmatprep.subr.bf16.mxu0 %v554_v0 }
  0x4a   :  { %459 = vmatpush3.bf16.msra.mxu0 %v490_v30 }
  0x4b   :  { %460 = vmatprep.subr.bf16.mxu0 %v554_v0 }
  0x4e   :  { %461 = vmatpush3.bf16.msra.mxu0 %v491_v31 }
 0x103   :  { %v119_v21 = vpop.f32.mrb[0].mxu0 }
 0x104   :  { %v120_v22 = vadd.f32 %v375_v20, %v119_v21  ;;  %v424_v23 = vpop.f32.mrb[1].mxu0 }
 0x105   :  { %v122_v24 = vpop.f32.mrb[2].mxu0 }
 0x106   :  { %v123_v25 = vadd.f32 %v375_v20, %v122_v24  ;;  %v425_v26 = vpop.f32.mrb[3].mxu0  ;;  %v126_v27 = vmax.f32 %v120_v22, 0.0 }
 0x108   :  { %v127_v28 = vmax.f32 %v123_v25, 0.0 }
 0x10a   :  { %v128_v29 = vpack.c.bf16 %v127_v28, %v126_v27 }
 0x10c   :  { %443 = vmatmul.mubr.bf16.vlgmr.msra.gmra.mrb[0].mxu1 %v128_v29 }
 0x1df   :  { %v234_v33 = vpop.f32.mrb[0].mxu1 }
 0x1e0   :  { %v235_v34 = vadd.f32 %v379_v32, %v234_v33  ;;  %v444_v35 = vpop.f32.mrb[1].mxu1 }
 0x1e1   :  { %v237_v36 = vpop.f32.mrb[2].mxu1 }
 0x1e2   :  { %v238_v37 = vadd.f32 %v379_v32, %v237_v36  ;;  %v445_v38 = vpop.f32.mrb[3].mxu1  ;;  %v241_v39 = vmax.f32 %v235_v34, 0.0 }
 0x1e4   :  { %v242_v40 = vmax.f32 %v238_v37, 0.0 }
 0x1e6   :  { %v243_v41 = vpack.c.bf16 %v242_v40, %v241_v39 }
 0x1e8   :  { %463 = vmatmul.mubr.bf16.vlgmr.msra.gmra.mrb[4].mxu0 %v243_v41 }
 0x2bb   :  { %v349_v43 = vpop.f32.mrb[4].mxu0 }
 0x2bc   :  { %v350_v44 = vadd.f32 %v388_v42, %v349_v43  ;;  %v464_v45 = vpop.f32.mrb[5].mxu0 }
 0x2bd   :  { %v352_v46 = vpop.f32.mrb[6].mxu0 }
 0x2be   :  { %v356_v47 = vsub.f32 0.0, %v350_v44  ;;  %v353_v48 = vadd.f32 %v388_v42, %v352_v46  ;;  %v465_v49 = vpop.f32.mrb[7].mxu0 }
 0x2c0   :  { %v358_v50 = vmul.f32 1.442695, %v356_v47  ;;  %v357_v51 = vsub.f32 0.0, %v353_v48 }
 0x2c2   :  { %492 = vpow2.f32 %v358_v50  ;;  %v360_v52 = vmul.f32 1.442695, %v357_v51 }
 0x2c4   :  { %494 = vpow2.f32 %v360_v52 }
 0x2cc   :  { %v493_v53 = vpop.eup %492 }
 0x2cd   :  { %v362_v54 = vadd.f32 1.0, %v493_v53 }
 0x2ce   :  { %v495_v55 = vpop.eup %494 }
 0x2cf   :  { %496 = vrcp.f32 %v362_v54  ;;  %v363_v56 = vadd.f32 1.0, %v495_v55 }
 0x2d1   :  { %498 = vrcp.f32 %v363_v56 }
 0x2d9   :  { %v497_v57 = vpop.eup %496 }
 0x2da   :  { %367 = vst.msk [vmem:[%s714_s7] sm:$0xff] %vm366_vm2, %v497_v57 }
 0x2db   :  { %v499_v58 = vpop.eup %498 }
 0x2dc   :  { %368 = vst.msk [vmem:[%s714_s7 + $0x8] sm:$0xff] %vm366_vm2, %v499_v58 }
 0x2dd   :  { %373 = vsyncpa [#allocation3], 1 }
 0x2de   :  { %374 = vsyncpa [#allocation5], 1 }

</bundles_post_ra>
